<compile_context>
chip_gen: v6e
topology: v6e:2x2x1
jax: 0.10.0
libtpu: 0.0.40
codegen_flags: <defaults>
</compile_context>

<pallas_src>
import functools

import jax
import jax.numpy as jnp
from jax.experimental import pallas as pl
from jax.experimental.pallas import tpu as pltpu

NUM_UNITS = 32
NUM_LAYERS = 4
MAX_T_TILE = 4096  # multiple of 256 so stationary MXU chunks fill all lanes


def highway_kernel(x_ref, w_ref, bl_ref, bg_ref, o_ref, *, num_layers, num_units):
    """One (C, T_tile) column tile of the highway network (NCT-native layout).

    x_ref  : (C, TT)    f32   input features x time
    w_ref  : (L, 2C, C) bf16  fused [linear; gate] weights, PyTorch (out, in)
    bl_ref : (L, C, 1)  f32   linear biases
    bg_ref : (L, C, 1)  f32   gate biases
    o_ref  : (C, TT)    f32   output features x time
    """
    C = num_units
    out = x_ref[...].astype(jnp.float32)
    for l in range(num_layers):  # static, tiny layer count -> fully unrolled
        # One fused bf16 MXU matmul per layer, f32 accumulation:
        #   [h_pre ; z] = W_cat @ out      (bias deferred until after slicing)
        y = jnp.dot(w_ref[l], out.astype(jnp.bfloat16),
                    preferred_element_type=jnp.float32)        # (2C, TT) f32
        h = jnp.maximum(y[:C, :] + bl_ref[l], 0.0)             # relu(linear)
        t = jax.nn.sigmoid(y[C:, :] + bg_ref[l])               # gate -> EUP
        out = out + t * (h - out)                              # highway combine
    o_ref[...] = out.astype(o_ref.dtype)


def fuse_highway_params(lin_w, lin_b, gate_w, gate_b):
    """Fuse linear + gate params once per parameter set (hoisted out of the
    per-call wrapper). Weights go to bf16 for the MXU; biases stay f32."""
    w_cat = jnp.concatenate([lin_w, gate_w], axis=1).astype(jnp.bfloat16)  # (L, 2C, C)
    b_lin = lin_b[:, :, None].astype(jnp.float32)                          # (L, C, 1)
    b_gate = gate_b[:, :, None].astype(jnp.float32)                        # (L, C, 1)
    return w_cat, b_lin, b_gate


def _pick_t_tile(B, T, max_t_tile):
    t_tile = T if T <= max_t_tile else max_t_tile
    # v7x: keep at least 2 grid steps so both TensorCores get parallel work.
    if B * pl.cdiv(T, t_tile) < 2 and T > 256:
        t_tile = ((pl.cdiv(T, 2) + 255) // 256) * 256
    return t_tile


def highwaynet_pallas(x_nct, w_cat, b_lin, b_gate, *, max_t_tile=MAX_T_TILE):
    """x_nct: (B, C, T) f32; fused params from fuse_highway_params."""
    B, C, T = x_nct.shape
    L = w_cat.shape[0]

    t_tile = _pick_t_tile(B, T, max_t_tile)
    grid = (B, pl.cdiv(T, t_tile))

    kernel = functools.partial(highway_kernel, num_layers=L, num_units=C)

    cost = pl.CostEstimate(
        flops=2 * L * (2 * C) * C * B * T,
        transcendentals=L * C * B * T,
        bytes_accessed=2 * B * C * T * 4 + int(w_cat.size) * 2
        + (int(b_lin.size) + int(b_gate.size)) * 4,
    )

    return pl.pallas_call(
        kernel,
        out_shape=jax.ShapeDtypeStruct((B, C, T), x_nct.dtype),
        grid_spec=pltpu.PrefetchScalarGridSpec(
            num_scalar_prefetch=0,
            grid=grid,
            in_specs=[
                # x tile: one batch (squeezed) x full C x lane-dense time tile.
                pl.BlockSpec((None, C, t_tile), lambda b, t: (b, 0, t)),
                # Grid-invariant fused weights / biases: constant block index
                # keeps them resident in VMEM, no per-step re-DMA.
                pl.BlockSpec((L, 2 * C, C), lambda b, t: (0, 0, 0)),
                pl.BlockSpec((L, C, 1), lambda b, t: (0, 0, 0)),
                pl.BlockSpec((L, C, 1), lambda b, t: (0, 0, 0)),
            ],
            out_specs=pl.BlockSpec((None, C, t_tile), lambda b, t: (b, 0, t)),
        ),
        compiler_params=pltpu.CompilerParams(
            dimension_semantics=("parallel", "parallel"),
            vmem_limit_bytes=32 * 1024 * 1024,
        ),
        cost_estimate=cost,
    )(x_nct, w_cat, b_lin, b_gate)


def highwaynet_ref(x_nct, lin_w, lin_b, gate_w, gate_b):
    """Pure-JAX f32 reference mirroring the PyTorch forward."""
    B, C, T = x_nct.shape
    out = jnp.transpose(x_nct, (0, 2, 1)).reshape(B * T, C)
    for l in range(lin_w.shape[0]):
        h = jax.nn.relu(out @ lin_w[l].T + lin_b[l])
        t = jax.nn.sigmoid(out @ gate_w[l].T + gate_b[l])
        out = h * t + out * (1.0 - t)
    return jnp.transpose(out.reshape(B, T, C), (0, 2, 1))


if __name__ == "__main__":
    B, C, T = 2, NUM_UNITS, 16
    key = jax.random.PRNGKey(0)
    kx, kw1, kb1, kw2, kb2 = jax.random.split(key, 5)

    x = jax.random.normal(kx, (B, C, T), dtype=jnp.float32)

    # Deterministic synthetic nn.Linear(num_units, num_units) parameters for
    # both linears and gates, stored in PyTorch (out, in) layout.
    scale = 1.0 / jnp.sqrt(jnp.float32(C))
    lin_w = jax.random.normal(kw1, (NUM_LAYERS, C, C), dtype=jnp.float32) * scale
    lin_b = jax.random.normal(kb1, (NUM_LAYERS, C), dtype=jnp.float32) * scale
    gate_w = jax.random.normal(kw2, (NUM_LAYERS, C, C), dtype=jnp.float32) * scale
    gate_b = jax.random.normal(kb2, (NUM_LAYERS, C), dtype=jnp.float32) * scale

    # Fuse once per parameter set (not per call).
    w_cat, b_lin, b_gate = fuse_highway_params(lin_w, lin_b, gate_w, gate_b)

    out = highwaynet_pallas(x, w_cat, b_lin, b_gate)
    out = jax.block_until_ready(out)

    ref = highwaynet_ref(x, lin_w, lin_b, gate_w, gate_b)
    assert out.shape == (B, C, T)
    # bf16 matmul operands with f32 accumulation -> relax tolerance vs f32 ref.
    assert jnp.allclose(out, ref, atol=2e-2, rtol=2e-2), "mismatch vs reference"

    print("KERNEL_OK")
</pallas_src>

<mosaic_0001>
module attributes {stable_mosaic.version = 11 : i64} {
  func.func @highway_kernel(%arg0: i32, %arg1: i32, %arg2: memref<1x32x16xf32, #tpu.memory_space<vmem>>, %arg3: memref<4x64x32xbf16, #tpu.memory_space<vmem>>, %arg4: memref<4x32x1xf32, #tpu.memory_space<vmem>>, %arg5: memref<4x32x1xf32, #tpu.memory_space<vmem>>, %arg6: memref<1x32x16xf32, #tpu.memory_space<vmem>>) attributes {dimension_semantics = [#tpu.dimension_semantics<parallel>, #tpu.dimension_semantics<parallel>], iteration_bounds = array<i64: 2, 1>, scalar_prefetch = 0 : i64, scratch_operands = 0 : i64, tpu.core_type = #tpu.core_type<tc>, window_params = [{transform_indices = @transform_0, window_bounds = array<i64: 1, 32, 16>}, {pipeline_mode = #tpu.pipeline_mode<synchronous>, transform_indices = @transform_1, window_bounds = array<i64: 4, 64, 32>}, {pipeline_mode = #tpu.pipeline_mode<synchronous>, transform_indices = @transform_2, window_bounds = array<i64: 4, 32, 1>}, {pipeline_mode = #tpu.pipeline_mode<synchronous>, transform_indices = @transform_3, window_bounds = array<i64: 4, 32, 1>}, {transform_indices = @transform_4, window_bounds = array<i64: 1, 32, 16>}]} {
    %c0 = arith.constant 0 : index
    %c0_0 = arith.constant 0 : index
    %c0_1 = arith.constant 0 : index
    %0 = vector.load %arg2[%c0, %c0_0, %c0_1] : memref<1x32x16xf32, #tpu.memory_space<vmem>>, vector<1x32x16xf32>
    %1 = vector.shape_cast %0 : vector<1x32x16xf32> to vector<32x16xf32>
    %c0_2 = arith.constant 0 : index
    %c0_3 = arith.constant 0 : index
    %c0_4 = arith.constant 0 : index
    %2 = vector.load %arg3[%c0_2, %c0_3, %c0_4] : memref<4x64x32xbf16, #tpu.memory_space<vmem>>, vector<1x64x32xbf16>
    %3 = vector.shape_cast %2 : vector<1x64x32xbf16> to vector<64x32xbf16>
    %4 = arith.truncf %1 : vector<32x16xf32> to vector<32x16xbf16>
    %cst = arith.constant dense<0.000000e+00> : vector<64x16xf32>
    %5 = tpu.matmul %3, %4, %cst {dimension_numbers = #tpu.dot_dimension_numbers<[1], [0], [0], [1], [0, 0, 1, 1], [], []>} : vector<64x32xbf16>, vector<32x16xbf16>, vector<64x16xf32> -> vector<64x16xf32>
    %6 = vector.extract_strided_slice %5 {offsets = [0, 0], sizes = [32, 16], strides = [1, 1]} : vector<64x16xf32> to vector<32x16xf32>
    %c0_5 = arith.constant 0 : index
    %c0_6 = arith.constant 0 : index
    %c0_7 = arith.constant 0 : index
    %7 = vector.load %arg4[%c0_5, %c0_6, %c0_7] : memref<4x32x1xf32, #tpu.memory_space<vmem>>, vector<1x32x1xf32>
    %8 = vector.shape_cast %7 : vector<1x32x1xf32> to vector<32x1xf32>
    %9 = vector.broadcast %8 : vector<32x1xf32> to vector<32x16xf32>
    %10 = arith.addf %6, %9 : vector<32x16xf32>
    %cst_8 = arith.constant 0.000000e+00 : f32
    %11 = vector.broadcast %cst_8 : f32 to vector<32x16xf32>
    %12 = arith.maximumf %10, %11 : vector<32x16xf32>
    %13 = vector.extract_strided_slice %5 {offsets = [32, 0], sizes = [32, 16], strides = [1, 1]} : vector<64x16xf32> to vector<32x16xf32>
    %c0_9 = arith.constant 0 : index
    %c0_10 = arith.constant 0 : index
    %c0_11 = arith.constant 0 : index
    %14 = vector.load %arg5[%c0_9, %c0_10, %c0_11] : memref<4x32x1xf32, #tpu.memory_space<vmem>>, vector<1x32x1xf32>
    %15 = vector.shape_cast %14 : vector<1x32x1xf32> to vector<32x1xf32>
    %16 = vector.broadcast %15 : vector<32x1xf32> to vector<32x16xf32>
    %17 = arith.addf %13, %16 : vector<32x16xf32>
    %18 = arith.negf %17 : vector<32x16xf32>
    %19 = math.exp %18 : vector<32x16xf32>
    %cst_12 = arith.constant 1.000000e+00 : f32
    %20 = vector.broadcast %cst_12 : f32 to vector<32x16xf32>
    %21 = arith.addf %20, %19 : vector<32x16xf32>
    %22 = arith.divf %20, %21 : vector<32x16xf32>
    %23 = arith.subf %12, %1 : vector<32x16xf32>
    %24 = arith.mulf %22, %23 : vector<32x16xf32>
    %25 = arith.addf %1, %24 : vector<32x16xf32>
    %c1 = arith.constant 1 : index
    %c0_13 = arith.constant 0 : index
    %c0_14 = arith.constant 0 : index
    %26 = vector.load %arg3[%c1, %c0_13, %c0_14] : memref<4x64x32xbf16, #tpu.memory_space<vmem>>, vector<1x64x32xbf16>
    %27 = vector.shape_cast %26 : vector<1x64x32xbf16> to vector<64x32xbf16>
    %28 = arith.truncf %25 : vector<32x16xf32> to vector<32x16xbf16>
    %cst_15 = arith.constant dense<0.000000e+00> : vector<64x16xf32>
    %29 = tpu.matmul %27, %28, %cst_15 {dimension_numbers = #tpu.dot_dimension_numbers<[1], [0], [0], [1], [0, 0, 1, 1], [], []>} : vector<64x32xbf16>, vector<32x16xbf16>, vector<64x16xf32> -> vector<64x16xf32>
    %30 = vector.extract_strided_slice %29 {offsets = [0, 0], sizes = [32, 16], strides = [1, 1]} : vector<64x16xf32> to vector<32x16xf32>
    %c1_16 = arith.constant 1 : index
    %c0_17 = arith.constant 0 : index
    %c0_18 = arith.constant 0 : index
    %31 = vector.load %arg4[%c1_16, %c0_17, %c0_18] : memref<4x32x1xf32, #tpu.memory_space<vmem>>, vector<1x32x1xf32>
    %32 = vector.shape_cast %31 : vector<1x32x1xf32> to vector<32x1xf32>
    %33 = vector.broadcast %32 : vector<32x1xf32> to vector<32x16xf32>
    %34 = arith.addf %30, %33 : vector<32x16xf32>
    %cst_19 = arith.constant 0.000000e+00 : f32
    %35 = vector.broadcast %cst_19 : f32 to vector<32x16xf32>
    %36 = arith.maximumf %34, %35 : vector<32x16xf32>
    %37 = vector.extract_strided_slice %29 {offsets = [32, 0], sizes = [32, 16], strides = [1, 1]} : vector<64x16xf32> to vector<32x16xf32>
    %c1_20 = arith.constant 1 : index
    %c0_21 = arith.constant 0 : index
    %c0_22 = arith.constant 0 : index
    %38 = vector.load %arg5[%c1_20, %c0_21, %c0_22] : memref<4x32x1xf32, #tpu.memory_space<vmem>>, vector<1x32x1xf32>
    %39 = vector.shape_cast %38 : vector<1x32x1xf32> to vector<32x1xf32>
    %40 = vector.broadcast %39 : vector<32x1xf32> to vector<32x16xf32>
    %41 = arith.addf %37, %40 : vector<32x16xf32>
    %42 = arith.negf %41 : vector<32x16xf32>
    %43 = math.exp %42 : vector<32x16xf32>
    %cst_23 = arith.constant 1.000000e+00 : f32
    %44 = vector.broadcast %cst_23 : f32 to vector<32x16xf32>
    %45 = arith.addf %44, %43 : vector<32x16xf32>
    %46 = arith.divf %44, %45 : vector<32x16xf32>
    %47 = arith.subf %36, %25 : vector<32x16xf32>
    %48 = arith.mulf %46, %47 : vector<32x16xf32>
    %49 = arith.addf %25, %48 : vector<32x16xf32>
    %c2 = arith.constant 2 : index
    %c0_24 = arith.constant 0 : index
    %c0_25 = arith.constant 0 : index
    %50 = vector.load %arg3[%c2, %c0_24, %c0_25] : memref<4x64x32xbf16, #tpu.memory_space<vmem>>, vector<1x64x32xbf16>
    %51 = vector.shape_cast %50 : vector<1x64x32xbf16> to vector<64x32xbf16>
    %52 = arith.truncf %49 : vector<32x16xf32> to vector<32x16xbf16>
    %cst_26 = arith.constant dense<0.000000e+00> : vector<64x16xf32>
    %53 = tpu.matmul %51, %52, %cst_26 {dimension_numbers = #tpu.dot_dimension_numbers<[1], [0], [0], [1], [0, 0, 1, 1], [], []>} : vector<64x32xbf16>, vector<32x16xbf16>, vector<64x16xf32> -> vector<64x16xf32>
    %54 = vector.extract_strided_slice %53 {offsets = [0, 0], sizes = [32, 16], strides = [1, 1]} : vector<64x16xf32> to vector<32x16xf32>
    %c2_27 = arith.constant 2 : index
    %c0_28 = arith.constant 0 : index
    %c0_29 = arith.constant 0 : index
    %55 = vector.load %arg4[%c2_27, %c0_28, %c0_29] : memref<4x32x1xf32, #tpu.memory_space<vmem>>, vector<1x32x1xf32>
    %56 = vector.shape_cast %55 : vector<1x32x1xf32> to vector<32x1xf32>
    %57 = vector.broadcast %56 : vector<32x1xf32> to vector<32x16xf32>
    %58 = arith.addf %54, %57 : vector<32x16xf32>
    %cst_30 = arith.constant 0.000000e+00 : f32
    %59 = vector.broadcast %cst_30 : f32 to vector<32x16xf32>
    %60 = arith.maximumf %58, %59 : vector<32x16xf32>
    %61 = vector.extract_strided_slice %53 {offsets = [32, 0], sizes = [32, 16], strides = [1, 1]} : vector<64x16xf32> to vector<32x16xf32>
    %c2_31 = arith.constant 2 : index
    %c0_32 = arith.constant 0 : index
    %c0_33 = arith.constant 0 : index
    %62 = vector.load %arg5[%c2_31, %c0_32, %c0_33] : memref<4x32x1xf32, #tpu.memory_space<vmem>>, vector<1x32x1xf32>
    %63 = vector.shape_cast %62 : vector<1x32x1xf32> to vector<32x1xf32>
    %64 = vector.broadcast %63 : vector<32x1xf32> to vector<32x16xf32>
    %65 = arith.addf %61, %64 : vector<32x16xf32>
    %66 = arith.negf %65 : vector<32x16xf32>
    %67 = math.exp %66 : vector<32x16xf32>
    %cst_34 = arith.constant 1.000000e+00 : f32
    %68 = vector.broadcast %cst_34 : f32 to vector<32x16xf32>
    %69 = arith.addf %68, %67 : vector<32x16xf32>
    %70 = arith.divf %68, %69 : vector<32x16xf32>
    %71 = arith.subf %60, %49 : vector<32x16xf32>
    %72 = arith.mulf %70, %71 : vector<32x16xf32>
    %73 = arith.addf %49, %72 : vector<32x16xf32>
    %c3 = arith.constant 3 : index
    %c0_35 = arith.constant 0 : index
    %c0_36 = arith.constant 0 : index
    %74 = vector.load %arg3[%c3, %c0_35, %c0_36] : memref<4x64x32xbf16, #tpu.memory_space<vmem>>, vector<1x64x32xbf16>
    %75 = vector.shape_cast %74 : vector<1x64x32xbf16> to vector<64x32xbf16>
    %76 = arith.truncf %73 : vector<32x16xf32> to vector<32x16xbf16>
    %cst_37 = arith.constant dense<0.000000e+00> : vector<64x16xf32>
    %77 = tpu.matmul %75, %76, %cst_37 {dimension_numbers = #tpu.dot_dimension_numbers<[1], [0], [0], [1], [0, 0, 1, 1], [], []>} : vector<64x32xbf16>, vector<32x16xbf16>, vector<64x16xf32> -> vector<64x16xf32>
    %78 = vector.extract_strided_slice %77 {offsets = [0, 0], sizes = [32, 16], strides = [1, 1]} : vector<64x16xf32> to vector<32x16xf32>
    %c3_38 = arith.constant 3 : index
    %c0_39 = arith.constant 0 : index
    %c0_40 = arith.constant 0 : index
    %79 = vector.load %arg4[%c3_38, %c0_39, %c0_40] : memref<4x32x1xf32, #tpu.memory_space<vmem>>, vector<1x32x1xf32>
    %80 = vector.shape_cast %79 : vector<1x32x1xf32> to vector<32x1xf32>
    %81 = vector.broadcast %80 : vector<32x1xf32> to vector<32x16xf32>
    %82 = arith.addf %78, %81 : vector<32x16xf32>
    %cst_41 = arith.constant 0.000000e+00 : f32
    %83 = vector.broadcast %cst_41 : f32 to vector<32x16xf32>
    %84 = arith.maximumf %82, %83 : vector<32x16xf32>
    %85 = vector.extract_strided_slice %77 {offsets = [32, 0], sizes = [32, 16], strides = [1, 1]} : vector<64x16xf32> to vector<32x16xf32>
    %c3_42 = arith.constant 3 : index
    %c0_43 = arith.constant 0 : index
    %c0_44 = arith.constant 0 : index
    %86 = vector.load %arg5[%c3_42, %c0_43, %c0_44] : memref<4x32x1xf32, #tpu.memory_space<vmem>>, vector<1x32x1xf32>
    %87 = vector.shape_cast %86 : vector<1x32x1xf32> to vector<32x1xf32>
    %88 = vector.broadcast %87 : vector<32x1xf32> to vector<32x16xf32>
    %89 = arith.addf %85, %88 : vector<32x16xf32>
    %90 = arith.negf %89 : vector<32x16xf32>
    %91 = math.exp %90 : vector<32x16xf32>
    %cst_45 = arith.constant 1.000000e+00 : f32
    %92 = vector.broadcast %cst_45 : f32 to vector<32x16xf32>
    %93 = arith.addf %92, %91 : vector<32x16xf32>
    %94 = arith.divf %92, %93 : vector<32x16xf32>
    %95 = arith.subf %84, %73 : vector<32x16xf32>
    %96 = arith.mulf %94, %95 : vector<32x16xf32>
    %97 = arith.addf %73, %96 : vector<32x16xf32>
    %c0_46 = arith.constant 0 : index
    %c0_47 = arith.constant 0 : index
    %c0_48 = arith.constant 0 : index
    %98 = vector.load %arg6[%c0_46, %c0_47, %c0_48] : memref<1x32x16xf32, #tpu.memory_space<vmem>>, vector<1x32x16xf32>
    %99 = vector.shape_cast %98 : vector<1x32x16xf32> to vector<32x16xf32>
    %100 = vector.shape_cast %97 : vector<32x16xf32> to vector<1x32x16xf32>
    tpu.vector_store %arg6[%c0_46, %c0_47, %c0_48], %100 {strides = array<i32>} : memref<1x32x16xf32, #tpu.memory_space<vmem>>, vector<1x32x16xf32>,
    return
  }
  func.func @transform_0(%arg0: i32, %arg1: i32) -> (i32, i32, i32) {
    %c0_i32 = arith.constant 0 : i32
    %c0_i32_0 = arith.constant 0 : i32
    return %arg0, %c0_i32, %arg1 : i32, i32, i32
  }
  func.func @transform_1(%arg0: i32, %arg1: i32) -> (i32, i32, i32) {
    %c0_i32 = arith.constant 0 : i32
    %c0_i32_0 = arith.constant 0 : i32
    %c0_i32_1 = arith.constant 0 : i32
    %c0_i32_2 = arith.constant 0 : i32
    return %c0_i32, %c0_i32_0, %c0_i32_1 : i32, i32, i32
  }
  func.func @transform_2(%arg0: i32, %arg1: i32) -> (i32, i32, i32) {
    %c0_i32 = arith.constant 0 : i32
    %c0_i32_0 = arith.constant 0 : i32
    %c0_i32_1 = arith.constant 0 : i32
    %c0_i32_2 = arith.constant 0 : i32
    return %c0_i32, %c0_i32_0, %c0_i32_1 : i32, i32, i32
  }
  func.func @transform_3(%arg0: i32, %arg1: i32) -> (i32, i32, i32) {
    %c0_i32 = arith.constant 0 : i32
    %c0_i32_0 = arith.constant 0 : i32
    %c0_i32_1 = arith.constant 0 : i32
    %c0_i32_2 = arith.constant 0 : i32
    return %c0_i32, %c0_i32_0, %c0_i32_1 : i32, i32, i32
  }
  func.func @transform_4(%arg0: i32, %arg1: i32) -> (i32, i32, i32) {
    %c0_i32 = arith.constant 0 : i32
    %c0_i32_0 = arith.constant 0 : i32
    return %arg0, %c0_i32, %arg1 : i32, i32, i32
  }
}

</mosaic_0001>

<bundles_post_ra>
// kernel: tpu_custom_call.1
= control target key start
LH: loop header
LB: loop body
LE: loop exit
PB: predicated region body
PF: predicated region fallthrough
CT: control target
= control target key end

     0   :  { %s1482_s15 = smov 0   ;;  %s1484_s16 = smov 0   ;;  %s1762_s0 = inlined_call_operand.vmem [shape: f32[2,32,16], index: 0, kind: input, shape index: {}]   ;;  %s1763_s1 = inlined_call_operand.vmem [shape: bf16[4,64,32], index: 1, kind: input, shape index: {}]   ;;  %s1764_s2 = inlined_call_operand.vmem [shape: f32[4,32,1], index: 2, kind: input, shape index: {}]   ;;  %s1765_s3 = inlined_call_operand.vmem [shape: f32[4,32,1], index: 3, kind: input, shape index: {}]   ;;  %s1766_s4 = inlined_call_operand.vmem [shape: f32[2,32,16], index: 4, kind: output, shape index: {}]  }
   0x1   :  { %s1486_s17 = smov 0  }
   0x2 LB: > { %s26_s18 = sadd.s32 1, %s1450_s16  ;;  %p1148_p0 = scmp.ge.s32.totalorder %s1454_s17, 1  ;;  %s1454_s17 = sphi %s1486_s17, %s14_s17   ;;  %s1450_s16 = sphi %s1484_s16, %s1768_s16   ;;  %s1446_s15 = sphi %s1482_s15, %s1767_s15  }
   0x3   : > { %p28_p1 = scmp.ge.s32.totalorder %s26_s18, 2  ;;  %p181_p2 = scmp.lt.s32.totalorder %s1454_s17, 3 }
   0x5   : > { %s1770_s18 = smov (%p28_p1, %s26_s18), 0  ;;  %p182_p3 = pnand %p1148_p0, %p181_p2 }
   0x6   : > { %p213_p4 = scmp.lt.s32.totalorder (!%p182_p3), %s1446_s15, 1 }
   0x7   : > { %185 = sbr.rel (%p182_p3) target bundleno = 1031 (0x407), region = 36 }
   0xc   : > { %v1352_v0 = vld [vmem:[%s1763_s1] sm:$0xff]   ;;  %vm264_vm0 = vcmask 261120   ;;  %s1772_s15 = smov (!%p213_p4, %s1446_s15), 1  ;;  %v1456_v1 = vmov 0   ;;  %v376_v2 = vld [vmem:[%s1765_s3 + $0x10] sm:$0xff]  ;;  %v377_v4 = vld [vmem:[%s1765_s3 + $0x18] sm:$0xff] }
   0xd   : > { %1281 = vmatprep.mubr.msk.bf16.mxu0 %vm264_vm0, %v1352_v0  ;;  %s1251_s21 = sshll.u32 %s1772_s15, 5  ;;  %1350 = vset.pattern.permute.xlu0 %v1456_v1  ;;  %v374_v3 = vld [vmem:[%s1765_s3] sm:$0xff]  ;;  %v375_v10 = vld [vmem:[%s1765_s3 + $0x8] sm:$0xff]  ;;  %v344_v12 = vld [vmem:[%s1764_s2 + $0x10] sm:$0xff]  ;;  %vm1056_vm1 = vcmask 130048  }
   0xe   : > { %1351 = vset.pattern.permute.xlu1 %v1456_v1  ;;  %s220_s28 = scalar_lea.vmem %s1762_s0, %s1251_s21  ;;  %390 = vperm.xlu0 %1350, %v376_v2   ;;  %v345_v13 = vld [vmem:[%s1764_s2 + $0x18] sm:$0xff]  ;;  %v1353_v14 = vld [vmem:[%s1763_s1 + $0x8] sm:$0xff]   ;;  %v1354_v15 = vld [vmem:[%s1763_s1 + $0x10] sm:$0xff]   ;;  %s228_s11 = scalar_lea.vmem %s1766_s4, %s1251_s21 }
   0xf   : > { %380 = vperm.xlu1 %1351, %v374_v3   ;;  %v1521_v5 = vld [vmem:[%s220_s28 + $0x10] sm:$0xff]  ;;  %v1523_v6 = vld [vmem:[%s220_s28 + $0x18] sm:$0xff]  ;;  %v1525_v7 = vld [vmem:[%s220_s28] sm:$0xff] }
  0x10   : > { %v243_v8 = vpack.c.bf16 %v1523_v6, %v1521_v5  ;;  %v1529_v9 = vld [vmem:[%s220_s28 + $0x8] sm:$0xff]  ;;  %v342_v16 = vld [vmem:[%s1764_s2] sm:$0xff]  ;;  %v1187_v18 = vld [vmem:[%s1765_s3 + $0x30] sm:$0xff] }
  0x11   : > { %v242_v11 = vpack.c.bf16 %v1529_v9, %v1525_v7  ;;  %v343_v17 = vld [vmem:[%s1764_s2 + $0x8] sm:$0xff]  ;;  %v1188_v19 = vld [vmem:[%s1765_s3 + $0x38] sm:$0xff]  ;;  %v1185_v21 = vld [vmem:[%s1765_s3 + $0x20] sm:$0xff] }
  0x12   : > { %1277 = vmatprep.subr.bf16.mxu0 %v243_v8  ;;  %395 = vperm.xlu0 %1350, %v377_v4   ;;  %v1355_v20 = vld [vmem:[%s1763_s1 + $0x18] sm:$0xff]   ;;  %v1186_v22 = vld [vmem:[%s1765_s3 + $0x28] sm:$0xff]  ;;  %v1183_v23 = vld [vmem:[%s1764_s2 + $0x30] sm:$0xff] }
  0x13   : > { %1278 = vmatpush3.bf16.msra.mxu0 %v243_v8  ;;  %385 = vperm.xlu1 %1351, %v375_v10   ;;  %v1184_v24 = vld [vmem:[%s1764_s2 + $0x38] sm:$0xff]  ;;  %v1181_v25 = vld [vmem:[%s1764_s2 + $0x20] sm:$0xff]  ;;  %v1182_v26 = vld [vmem:[%s1764_s2 + $0x28] sm:$0xff] }
  0x14   : > { %1279 = vmatprep.subr.bf16.mxu0 %v242_v11  ;;  %v1215_v27 = vld [vmem:[%s1765_s3 + $0x50] sm:$0xff]  ;;  %v1216_v28 = vld [vmem:[%s1765_s3 + $0x58] sm:$0xff]  ;;  %v1213_v29 = vld [vmem:[%s1765_s3 + $0x40] sm:$0xff] }
  0x15   : > { %v1214_v30 = vld [vmem:[%s1765_s3 + $0x48] sm:$0xff]  ;;  %v1211_v31 = vld [vmem:[%s1764_s2 + $0x50] sm:$0xff]  ;;  %v1212_v32 = vld [vmem:[%s1764_s2 + $0x58] sm:$0xff] }
  0x16   : > { %358 = vperm.xlu0 %1350, %v344_v12   ;;  %v1209_v33 = vld [vmem:[%s1764_s2 + $0x40] sm:$0xff]  ;;  %v1210_v34 = vld [vmem:[%s1764_s2 + $0x48] sm:$0xff]  ;;  %v1243_v37 = vld [vmem:[%s1765_s3 + $0x70] sm:$0xff] }
  0x17   : > { %1280 = vmatpush3.bf16.msra.mxu0 %v242_v11  ;;  %363 = vperm.xlu1 %1351, %v345_v13   ;;  %v1241_v35 = vld [vmem:[%s1765_s3 + $0x60] sm:$0xff]  ;;  %v1242_v36 = vld [vmem:[%s1765_s3 + $0x68] sm:$0xff]  ;;  %v1244_v38 = vld [vmem:[%s1765_s3 + $0x78] sm:$0xff] }
  0x18   : > { %v1237_v39 = vld [vmem:[%s1764_s2 + $0x60] sm:$0xff]  ;;  %v1238_v40 = vld [vmem:[%s1764_s2 + $0x68] sm:$0xff]  ;;  %v1239_v41 = vld [vmem:[%s1764_s2 + $0x70] sm:$0xff] }
  0x19   : > { %v1240_v42 = vld [vmem:[%s1764_s2 + $0x78] sm:$0xff]  ;;  %v1356_v43 = vld [vmem:[%s1763_s1 + $0x20] sm:$0xff]  }
  0x1a   : > { %1282 = vmatmul.mubr.msk.bf16.vlgmr.msra.gmra.mxu0 %vm264_vm0, %v1353_v14  ;;  %348 = vperm.xlu0 %1350, %v342_v16  }
  0x1b   : > { %1285 = vmatprep.mubr.msk.bf16.mxu0 %vm264_vm0, %v1354_v15  ;;  %353 = vperm.xlu1 %1351, %v343_v17  }
  0x1c   : > { %1293 = vmatprep.mubr.msk.bf16.mxu1 %vm264_vm0, %v1356_v43 }
  0x1e   : > { %596 = vperm.xlu0 %1350, %v1187_v18  }
  0x1f   : > { %601 = vperm.xlu1 %1351, %v1188_v19  }
  0x22   : > { %1286 = vmatmul.mubr.msk.bf16.gmra.mxu0 %vm264_vm0, %v1355_v20  ;;  %586 = vperm.xlu0 %1350, %v1185_v21  }
  0x23   : > { %591 = vperm.xlu1 %1351, %v1186_v22  }
  0x26   : > { %563 = vperm.xlu0 %1350, %v1183_v23  }
  0x27   : > { %568 = vperm.xlu1 %1351, %v1184_v24  }
  0x2a   : > { %553 = vperm.xlu0 %1350, %v1181_v25  }
  0x2b   : > { %558 = vperm.xlu1 %1351, %v1182_v26  }
  0x2e   : > { %802 = vperm.xlu0 %1350, %v1215_v27  }
  0x2f   : > { %807 = vperm.xlu1 %1351, %v1216_v28  }
  0x32   : > { %792 = vperm.xlu0 %1350, %v1213_v29  }
  0x33   : > { %797 = vperm.xlu1 %1351, %v1214_v30  }
  0x36   : > { %769 = vperm.xlu0 %1350, %v1211_v31  }
  0x37   : > { %774 = vperm.xlu1 %1351, %v1212_v32  }
  0x3a   : > { %759 = vperm.xlu0 %1350, %v1209_v33  }
  0x3b   : > { %764 = vperm.xlu1 %1351, %v1210_v34  }
  0x3e   : > { %998 = vperm.xlu0 %1350, %v1241_v35  }
  0x3f   : > { %1003 = vperm.xlu1 %1351, %v1242_v36  }
  0x42   : > { %1008 = vperm.xlu0 %1350, %v1243_v37  }
  0x43   : > { %1013 = vperm.xlu1 %1351, %v1244_v38  }
  0x46   : > { %965 = vperm.xlu0 %1350, %v1237_v39  }
  0x47   : > { %970 = vperm.xlu1 %1351, %v1238_v40  }
  0x4a   : > { %975 = vperm.xlu0 %1350, %v1239_v41  }
  0x4b   : > { %980 = vperm.xlu1 %1351, %v1240_v42  }
  0x89   : > { %v391_v47 = vpop.permute.xlu0 %390 }
  0x8a   : > { %v381_v49 = vpop.permute.xlu1 %380 }
  0x8d   : > { %v396_v55 = vpop.permute.xlu0 %395 }
  0x8e   : > { %v386_v59 = vpop.permute.xlu1 %385 }
  0x91   : > { %v359_v8 = vpop.permute.xlu0 %358 }
  0x92   : > { %v364_v12 = vpop.permute.xlu1 %363 }
  0x95   : > { %v349_v15 = vpop.permute.xlu0 %348 }
  0x96   : > { %v354_v18 = vpop.permute.xlu1 %353 }
  0xda   : > { %v1283_v44 = vpop.f32.mrf.mxu0 }
  0xdb   : > { %v368_v14 = vadd.f32 %v1283_v44, %v359_v8  ;;  %v597_v44 = vpop.permute.xlu0 %596 }
  0xdc   : > { %v311_v45 = vpop.f32.mrf.mxu0 }
  0xdd   : > { %v366_v16 = vadd.f32 %v349_v15, %v311_v45  ;;  %v372_v19 = vmax.f32 %v368_v14, 0.0 }
  0xde   : > { %v1284_v46 = vpop.f32.mrf.mxu0 }
  0xdf   : > { %v369_v17 = vadd.f32 %v1284_v46, %v364_v12  ;;  %v370_v21 = vmax.f32 %v366_v16, 0.0  ;;  %v428_v24 = vsub.f32 %v372_v19, %v1521_v5 }
  0xe0   : > { %v314_v48 = vpop.f32.mrf.mxu0 }
  0xe1   : > { %v367_v20 = vadd.f32 %v354_v18, %v314_v48  ;;  %v373_v22 = vmax.f32 %v369_v17, 0.0  ;;  %v426_v27 = vsub.f32 %v370_v21, %v1525_v7 }
  0xe2   : > { %v1287_v50 = vpop.f32.mrf.mxu0 }
  0xe3   : > { %v400_v51 = vadd.f32 %v1287_v50, %v391_v47  ;;  %v371_v25 = vmax.f32 %v367_v20, 0.0  ;;  %v429_v28 = vsub.f32 %v373_v22, %v1523_v6  ;;  %v602_v47 = vpop.permute.xlu1 %601  ;;  %v587_v50 = vpop.permute.xlu0 %586 }
  0xe4   : > { %v327_v52 = vpop.f32.mrf.mxu0 }
  0xe5   : > { %v1163_v53 = vmul.f32 -1.442695, %v400_v51  ;;  %v398_v54 = vadd.f32 %v381_v49, %v327_v52  ;;  %v427_v31 = vsub.f32 %v371_v25, %v1529_v9 }
  0xe6   : > { %v1288_v56 = vpop.f32.mrf.mxu0 }
  0xe7   : > { %1368 = vpow2.f32 %v1163_v53  ;;  %v1161_v57 = vmul.f32 -1.442695, %v398_v54  ;;  %v401_v58 = vadd.f32 %v1288_v56, %v396_v55 }
  0xe8   : > { %v330_v60 = vpop.f32.mrf.mxu0 }
  0xe9   : > { %1370 = vpow2.f32 %v1161_v57  ;;  %v1164_v61 = vmul.f32 -1.442695, %v401_v58  ;;  %v399_v62 = vadd.f32 %v386_v59, %v330_v60  ;;  %v592_v57 = vpop.permute.xlu1 %591 }
  0xeb   : > { %1372 = vpow2.f32 %v1164_v61  ;;  %v1162_v63 = vmul.f32 -1.442695, %v399_v62 }
  0xed   : > { %1374 = vpow2.f32 %v1162_v63 }
  0xf4   : > { %v1369_v0 = vpop.eup %1368 }
  0xf5   : > { %v416_v1 = vadd.f32 1.0, %v1369_v0 }
  0xf6   : > { %v1371_v2 = vpop.eup %1370 }
  0xf7   : > { %1376 = vrcp.f32 %v416_v1  ;;  %v414_v3 = vadd.f32 1.0, %v1371_v2 }
  0xf8   : > { %v1373_v4 = vpop.eup %1372 }
  0xf9   : > { %1378 = vrcp.f32 %v414_v3  ;;  %v417_v10 = vadd.f32 1.0, %v1373_v4  ;;  %v564_v3 = vpop.permute.xlu0 %563 }
  0xfa   : > { %v1375_v11 = vpop.eup %1374 }
  0xfb   : > { %1380 = vrcp.f32 %v417_v10  ;;  %v415_v13 = vadd.f32 1.0, %v1375_v11  ;;  %v569_v10 = vpop.permute.xlu1 %568 }
  0xfd   : > { %1382 = vrcp.f32 %v415_v13  ;;  %v554_v13 = vpop.permute.xlu0 %553 }
  0xff   : > { %v559_v16 = vpop.permute.xlu1 %558 }
 0x104   : > { %v1377_v23 = vpop.eup %1376 }
 0x105   : > { %v432_v29 = vmul.f32 %v1377_v23, %v428_v24 }
 0x106   : > { %v1379_v26 = vpop.eup %1378 }
 0x107   : > { %v430_v33 = vmul.f32 %v1379_v26, %v426_v27  ;;  %v1641_v35 = vadd.f32 %v432_v29, %v1521_v5  ;;  %v1357_v5 = vld [vmem:[%s1763_s1 + $0x28] sm:$0xff]  }
 0x108   : > { %v1381_v30 = vpop.eup %1380 }
 0x109   : > { %v433_v32 = vmul.f32 %v1381_v30, %v429_v28  ;;  %v1649_v39 = vadd.f32 %v430_v33, %v1525_v7  ;;  %v1359_v7 = vld [vmem:[%s1763_s1 + $0x38] sm:$0xff]  }
 0x10a   : > { %v1383_v34 = vpop.eup %1382 }
 0x10b   : > { %v1644_v36 = vadd.f32 %v433_v32, %v1523_v6  ;;  %v431_v37 = vmul.f32 %v1383_v34, %v427_v31  ;;  %v1358_v6 = vld [vmem:[%s1763_s1 + $0x30] sm:$0xff]  }
 0x10d   : > { %v448_v38 = vpack.c.bf16 %v1644_v36, %v1641_v35  ;;  %v1652_v40 = vadd.f32 %v431_v37, %v1529_v9  ;;  %v1360_v9 = vld [vmem:[%s1763_s1 + $0x40] sm:$0xff]  }
 0x10e   : > { %1305 = vmatprep.mubr.msk.bf16.mxu0 %vm264_vm0, %v1360_v9 }
 0x10f   : > { %1289 = vmatprep.subr.bf16.mxu1 %v448_v38  ;;  %v447_v41 = vpack.c.bf16 %v1652_v40, %v1649_v39 }
 0x110   : > { %1290 = vmatpush3.bf16.msra.mxu1 %v448_v38 }
 0x111   : > { %1291 = vmatprep.subr.bf16.mxu1 %v447_v41 }
 0x114   : > { %1292 = vmatpush3.bf16.msra.mxu1 %v447_v41 }
 0x117   : > { %1294 = vmatmul.mubr.msk.bf16.vlgmr.msra.gmra.mxu1 %vm264_vm0, %v1357_v5 }
 0x118   : > { %1297 = vmatprep.mubr.msk.bf16.mxu1 %vm264_vm0, %v1358_v6 }
 0x11f   : > { %1298 = vmatmul.mubr.msk.bf16.gmra.mxu1 %vm264_vm0, %v1359_v7 }
 0x1d7   : > { %v1295_v42 = vpop.f32.mrf.mxu1 }
 0x1d8   : > { %v573_v12 = vadd.f32 %v1295_v42, %v564_v3  ;;  %v803_v42 = vpop.permute.xlu0 %802 }
 0x1d9   : > { %v515_v43 = vpop.f32.mrf.mxu1 }
 0x1da   : > { %v571_v14 = vadd.f32 %v554_v13, %v515_v43  ;;  %v577_v17 = vmax.f32 %v573_v12, 0.0 }
 0x1db   : > { %v1296_v45 = vpop.f32.mrf.mxu1 }
 0x1dc   : > { %v574_v15 = vadd.f32 %v1296_v45, %v569_v10  ;;  %v575_v19 = vmax.f32 %v571_v14, 0.0  ;;  %v634_v22 = vsub.f32 %v577_v17, %v1641_v35  ;;  %v808_v45 = vpop.permute.xlu1 %807 }
 0x1dd   : > { %v518_v46 = vpop.f32.mrf.mxu1 }
 0x1de   : > { %v572_v18 = vadd.f32 %v559_v16, %v518_v46  ;;  %v578_v20 = vmax.f32 %v574_v15, 0.0  ;;  %v632_v25 = vsub.f32 %v575_v19, %v1649_v39 }
 0x1df   : > { %v1299_v48 = vpop.f32.mrf.mxu1 }
 0x1e0   : > { %v606_v49 = vadd.f32 %v1299_v48, %v597_v44  ;;  %v576_v23 = vmax.f32 %v572_v18, 0.0  ;;  %v635_v26 = vsub.f32 %v578_v20, %v1644_v36  ;;  %v793_v48 = vpop.permute.xlu0 %792 }
 0x1e1   : > { %v531_v51 = vpop.f32.mrf.mxu1 }
 0x1e2   : > { %v1191_v52 = vmul.f32 -1.442695, %v606_v49  ;;  %v604_v53 = vadd.f32 %v587_v50, %v531_v51  ;;  %v633_v29 = vsub.f32 %v576_v23, %v1652_v40 }
 0x1e3   : > { %v1300_v54 = vpop.f32.mrf.mxu1 }
 0x1e4   : > { %1384 = vpow2.f32 %v1191_v52  ;;  %v1189_v55 = vmul.f32 -1.442695, %v604_v53  ;;  %v607_v56 = vadd.f32 %v1300_v54, %v602_v47 }
 0x1e5   : > { %v534_v58 = vpop.f32.mrf.mxu1 }
 0x1e6   : > { %1386 = vpow2.f32 %v1189_v55  ;;  %v1192_v59 = vmul.f32 -1.442695, %v607_v56  ;;  %v605_v60 = vadd.f32 %v592_v57, %v534_v58  ;;  %v798_v55 = vpop.permute.xlu1 %797 }
 0x1e8   : > { %1388 = vpow2.f32 %v1192_v59  ;;  %v1190_v61 = vmul.f32 -1.442695, %v605_v60 }
 0x1ea   : > { %1390 = vpow2.f32 %v1190_v61 }
 0x1f1   : > { %v1385_v62 = vpop.eup %1384 }
 0x1f2   : > { %v622_v63 = vadd.f32 1.0, %v1385_v62 }
 0x1f3   : > { %v1387_v0 = vpop.eup %1386 }
 0x1f4   : > { %1392 = vrcp.f32 %v622_v63  ;;  %v620_v1 = vadd.f32 1.0, %v1387_v0 }
 0x1f5   : > { %v1389_v2 = vpop.eup %1388 }
 0x1f6   : > { %1394 = vrcp.f32 %v620_v1  ;;  %v623_v4 = vadd.f32 1.0, %v1389_v2  ;;  %v770_v1 = vpop.permute.xlu0 %769 }
 0x1f7   : > { %v1391_v8 = vpop.eup %1390 }
 0x1f8   : > { %1396 = vrcp.f32 %v623_v4  ;;  %v621_v11 = vadd.f32 1.0, %v1391_v8  ;;  %v775_v4 = vpop.permute.xlu1 %774 }
 0x1fa   : > { %1398 = vrcp.f32 %v621_v11  ;;  %v760_v11 = vpop.permute.xlu0 %759 }
 0x1fc   : > { %v765_v14 = vpop.permute.xlu1 %764 }
 0x201   : > { %v1393_v21 = vpop.eup %1392 }
 0x202   : > { %v638_v27 = vmul.f32 %v1393_v21, %v634_v22 }
 0x203   : > { %v1395_v24 = vpop.eup %1394 }
 0x204   : > { %v636_v31 = vmul.f32 %v1395_v24, %v632_v25  ;;  %v1677_v33 = vadd.f32 %v638_v27, %v1641_v35  ;;  %v1361_v35 = vld [vmem:[%s1763_s1 + $0x48] sm:$0xff]  }
 0x205   : > { %v1397_v28 = vpop.eup %1396 }
 0x206   : > { %v639_v30 = vmul.f32 %v1397_v28, %v635_v26  ;;  %v1685_v41 = vadd.f32 %v636_v31, %v1649_v39  ;;  %v1363_v39 = vld [vmem:[%s1763_s1 + $0x58] sm:$0xff]  }
 0x207   : > { %v1399_v32 = vpop.eup %1398 }
 0x208   : > { %v1680_v34 = vadd.f32 %v639_v30, %v1644_v36  ;;  %v637_v37 = vmul.f32 %v1399_v32, %v633_v29  ;;  %v1362_v36 = vld [vmem:[%s1763_s1 + $0x50] sm:$0xff]  }
 0x20a   : > { %v654_v38 = vpack.c.bf16 %v1680_v34, %v1677_v33  ;;  %v1688_v5 = vadd.f32 %v637_v37, %v1652_v40  ;;  %v1364_v40 = vld [vmem:[%s1763_s1 + $0x60] sm:$0xff]  }
 0x20b   : > { %1317 = vmatprep.mubr.msk.bf16.mxu1 %vm264_vm0, %v1364_v40 }
 0x20c   : > { %1301 = vmatprep.subr.bf16.mxu0 %v654_v38  ;;  %v653_v6 = vpack.c.bf16 %v1688_v5, %v1685_v41 }
 0x20d   : > { %1302 = vmatpush3.bf16.msra.mxu0 %v654_v38 }
 0x20e   : > { %1303 = vmatprep.subr.bf16.mxu0 %v653_v6 }
 0x211   : > { %1304 = vmatpush3.bf16.msra.mxu0 %v653_v6 }
 0x214   : > { %1306 = vmatmul.mubr.msk.bf16.vlgmr.msra.gmra.mxu0 %vm264_vm0, %v1361_v35 }
 0x215   : > { %1309 = vmatprep.mubr.msk.bf16.mxu0 %vm264_vm0, %v1362_v36 }
 0x21c   : > { %1310 = vmatmul.mubr.msk.bf16.gmra.mxu0 %vm264_vm0, %v1363_v39  ;;  %v999_v39 = vpop.permute.xlu0 %998 }
 0x2d4   : > { %v1307_v7 = vpop.f32.mrf.mxu0 }
 0x2d5   : > { %v779_v10 = vadd.f32 %v1307_v7, %v770_v1 }
 0x2d6   : > { %v721_v9 = vpop.f32.mrf.mxu0 }
 0x2d7   : > { %v777_v12 = vadd.f32 %v760_v11, %v721_v9  ;;  %v783_v15 = vmax.f32 %v779_v10, 0.0  ;;  %v1004_v9 = vpop.permute.xlu1 %1003 }
 0x2d8   : > { %v1308_v43 = vpop.f32.mrf.mxu0 }
 0x2d9   : > { %v780_v13 = vadd.f32 %v1308_v43, %v775_v4  ;;  %v781_v17 = vmax.f32 %v777_v12, 0.0  ;;  %v840_v20 = vsub.f32 %v783_v15, %v1677_v33  ;;  %v1009_v43 = vpop.permute.xlu0 %1008 }
 0x2da   : > { %v724_v44 = vpop.f32.mrf.mxu0 }
 0x2db   : > { %v778_v16 = vadd.f32 %v765_v14, %v724_v44  ;;  %v784_v18 = vmax.f32 %v780_v13, 0.0  ;;  %v838_v23 = vsub.f32 %v781_v17, %v1685_v41 }
 0x2dc   : > { %v1311_v46 = vpop.f32.mrf.mxu0 }
 0x2dd   : > { %v812_v47 = vadd.f32 %v1311_v46, %v803_v42  ;;  %v782_v21 = vmax.f32 %v778_v16, 0.0  ;;  %v841_v24 = vsub.f32 %v784_v18, %v1680_v34 }
 0x2de   : > { %v737_v49 = vpop.f32.mrf.mxu0 }
 0x2df   : > { %v1219_v50 = vmul.f32 -1.442695, %v812_v47  ;;  %v810_v51 = vadd.f32 %v793_v48, %v737_v49  ;;  %v839_v27 = vsub.f32 %v782_v21, %v1688_v5  ;;  %v1014_v49 = vpop.permute.xlu1 %1013 }
 0x2e0   : > { %v1312_v52 = vpop.f32.mrf.mxu0 }
 0x2e1   : > { %1400 = vpow2.f32 %v1219_v50  ;;  %v1217_v53 = vmul.f32 -1.442695, %v810_v51  ;;  %v813_v54 = vadd.f32 %v1312_v52, %v808_v45 }
 0x2e2   : > { %v740_v56 = vpop.f32.mrf.mxu0 }
 0x2e3   : > { %1402 = vpow2.f32 %v1217_v53  ;;  %v1220_v57 = vmul.f32 -1.442695, %v813_v54  ;;  %v811_v58 = vadd.f32 %v798_v55, %v740_v56 }
 0x2e5   : > { %1404 = vpow2.f32 %v1220_v57  ;;  %v1218_v59 = vmul.f32 -1.442695, %v811_v58  ;;  %v966_v58 = vpop.permute.xlu0 %965 }
 0x2e7   : > { %1406 = vpow2.f32 %v1218_v59 }
 0x2ee   : > { %v1401_v60 = vpop.eup %1400 }
 0x2ef   : > { %v828_v61 = vadd.f32 1.0, %v1401_v60 }
 0x2f0   : > { %v1403_v62 = vpop.eup %1402 }
 0x2f1   : > { %1408 = vrcp.f32 %v828_v61  ;;  %v826_v63 = vadd.f32 1.0, %v1403_v62 }
 0x2f2   : > { %v1405_v0 = vpop.eup %1404 }
 0x2f3   : > { %1410 = vrcp.f32 %v826_v63  ;;  %v829_v2 = vadd.f32 1.0, %v1405_v0  ;;  %v971_v63 = vpop.permute.xlu1 %970 }
 0x2f4   : > { %v1407_v3 = vpop.eup %1406 }
 0x2f5   : > { %1412 = vrcp.f32 %v829_v2  ;;  %v827_v8 = vadd.f32 1.0, %v1407_v3  ;;  %v976_v2 = vpop.permute.xlu0 %975 }
 0x2f7   : > { %1414 = vrcp.f32 %v827_v8  ;;  %v981_v10 = vpop.permute.xlu1 %980 }
 0x2fe   : > { %v1409_v19 = vpop.eup %1408 }
 0x2ff   : > { %v844_v25 = vmul.f32 %v1409_v19, %v840_v20 }
 0x300   : > { %v1411_v22 = vpop.eup %1410 }
 0x301   : > { %v842_v29 = vmul.f32 %v1411_v22, %v838_v23  ;;  %v1713_v31 = vadd.f32 %v844_v25, %v1677_v33  ;;  %v1365_v33 = vld [vmem:[%s1763_s1 + $0x68] sm:$0xff]  }
 0x302   : > { %v1413_v26 = vpop.eup %1412 }
 0x303   : > { %v845_v28 = vmul.f32 %v1413_v26, %v841_v24  ;;  %v1721_v6 = vadd.f32 %v842_v29, %v1685_v41  ;;  %v1367_v41 = vld [vmem:[%s1763_s1 + $0x78] sm:$0xff]  }
 0x304   : > { %v1415_v30 = vpop.eup %1414 }
 0x305   : > { %v1716_v32 = vadd.f32 %v845_v28, %v1680_v34  ;;  %v843_v37 = vmul.f32 %v1415_v30, %v839_v27  ;;  %v1366_v34 = vld [vmem:[%s1763_s1 + $0x70] sm:$0xff]  }
 0x307   : > { %v860_v38 = vpack.c.bf16 %v1716_v32, %v1713_v31  ;;  %v1724_v35 = vadd.f32 %v843_v37, %v1688_v5 }
 0x309   : > { %1313 = vmatprep.subr.bf16.mxu1 %v860_v38  ;;  %v859_v36 = vpack.c.bf16 %v1724_v35, %v1721_v6 }
 0x30a   : > { %1314 = vmatpush3.bf16.msra.mxu1 %v860_v38 }
 0x30b   : > { %1315 = vmatprep.subr.bf16.mxu1 %v859_v36 }
 0x30e   : > { %1316 = vmatpush3.bf16.msra.mxu1 %v859_v36 }
 0x311   : > { %1318 = vmatmul.mubr.msk.bf16.vlgmr.msra.gmra.mxu1 %vm264_vm0, %v1365_v33 }
 0x312   : > { %1321 = vmatprep.mubr.msk.bf16.mxu1 %vm264_vm0, %v1366_v34 }
 0x319   : > { %1322 = vmatmul.mubr.msk.bf16.gmra.mxu1 %vm264_vm0, %v1367_v41 }
 0x3d1   : > { %v1319_v5 = vpop.f32.mrf.mxu1 }
 0x3d2   : > { %v985_v3 = vadd.f32 %v1319_v5, %v976_v2 }
 0x3d3   : > { %v927_v40 = vpop.f32.mrf.mxu1 }
 0x3d4   : > { %v983_v8 = vadd.f32 %v966_v58, %v927_v40  ;;  %v989_v11 = vmax.f32 %v985_v3, 0.0 }
 0x3d5   : > { %v1320_v7 = vpop.f32.mrf.mxu1 }
 0x3d6   : > { %v986_v12 = vadd.f32 %v1320_v7, %v981_v10  ;;  %v987_v13 = vmax.f32 %v983_v8, 0.0  ;;  %v1046_v15 = vsub.f32 %v989_v11, %v1713_v31 }
 0x3d7   : > { %v930_v42 = vpop.f32.mrf.mxu1 }
 0x3d8   : > { %v984_v14 = vadd.f32 %v971_v63, %v930_v42  ;;  %v990_v16 = vmax.f32 %v986_v12, 0.0  ;;  %v1044_v18 = vsub.f32 %v987_v13, %v1721_v6 }
 0x3d9   : > { %v1323_v44 = vpop.f32.mrf.mxu1 }
 0x3da   : > { %v1018_v45 = vadd.f32 %v1323_v44, %v1009_v43  ;;  %v988_v19 = vmax.f32 %v984_v14, 0.0  ;;  %v1047_v22 = vsub.f32 %v990_v16, %v1716_v32 }
 0x3db   : > { %v943_v46 = vpop.f32.mrf.mxu1 }
 0x3dc   : > { %v1247_v47 = vmul.f32 -1.442695, %v1018_v45  ;;  %v1016_v48 = vadd.f32 %v999_v39, %v943_v46  ;;  %v1045_v26 = vsub.f32 %v988_v19, %v1724_v35 }
 0x3dd   : > { %v1324_v50 = vpop.f32.mrf.mxu1 }
 0x3de   : > { %1416 = vpow2.f32 %v1247_v47  ;;  %v1245_v51 = vmul.f32 -1.442695, %v1016_v48  ;;  %v1019_v52 = vadd.f32 %v1324_v50, %v1014_v49 }
 0x3df   : > { %v946_v53 = vpop.f32.mrf.mxu1 }
 0x3e0   : > { %1418 = vpow2.f32 %v1245_v51  ;;  %v1248_v54 = vmul.f32 -1.442695, %v1019_v52  ;;  %v1017_v55 = vadd.f32 %v1004_v9, %v946_v53 }
 0x3e2   : > { %1420 = vpow2.f32 %v1248_v54  ;;  %v1246_v56 = vmul.f32 -1.442695, %v1017_v55 }
 0x3e4   : > { %1422 = vpow2.f32 %v1246_v56 }
 0x3eb   : > { %v1417_v57 = vpop.eup %1416 }
 0x3ec   : > { %v1034_v59 = vadd.f32 1.0, %v1417_v57 }
 0x3ed   : > { %v1419_v60 = vpop.eup %1418 }
 0x3ee   : > { %1424 = vrcp.f32 %v1034_v59  ;;  %v1032_v61 = vadd.f32 1.0, %v1419_v60 }
 0x3ef   : > { %v1421_v62 = vpop.eup %1420 }
 0x3f0   : > { %1426 = vrcp.f32 %v1032_v61  ;;  %v1035_v0 = vadd.f32 1.0, %v1421_v62 }
 0x3f1   : > { %v1423_v1 = vpop.eup %1422 }
 0x3f2   : > { %1428 = vrcp.f32 %v1035_v0  ;;  %v1033_v4 = vadd.f32 1.0, %v1423_v1 }
 0x3f4   : > { %1430 = vrcp.f32 %v1033_v4 }
 0x3fb   : > { %v1425_v17 = vpop.eup %1424 }
 0x3fc   : > { %v1050_v20 = vmul.f32 %v1425_v17, %v1046_v15 }
 0x3fd   : > { %v1427_v21 = vpop.eup %1426 }
 0x3fe   : > { %v1054_v23 = vadd.f32 %v1050_v20, %v1713_v31  ;;  %v1048_v24 = vmul.f32 %v1427_v21, %v1044_v18 }
 0x3ff   : > { %v1429_v25 = vpop.eup %1428 }
 0x400   : > { %1059 = vst.msk [vmem:[%s228_s11 + $0x10] sm:$0xff] %vm1056_vm1, %v1054_v23  ;;  %v1052_v27 = vadd.f32 %v1048_v24, %v1721_v6  ;;  %v1051_v28 = vmul.f32 %v1429_v25, %v1047_v22 }
 0x401   : > { %v1431_v29 = vpop.eup %1430 }
 0x402   : > { %1057 = vst.msk [vmem:[%s228_s11] sm:$0xff] %vm1056_vm1, %v1052_v27  ;;  %v1055_v30 = vadd.f32 %v1051_v28, %v1716_v32  ;;  %v1049_v37 = vmul.f32 %v1431_v29, %v1045_v26 }
 0x404   : > { %1060 = vst.msk [vmem:[%s228_s11 + $0x18] sm:$0xff] %vm1056_vm1, %v1055_v30  ;;  %v1053_v38 = vadd.f32 %v1049_v37, %v1724_v35 }
 0x406   : > { %1058 = vst.msk [vmem:[%s228_s11 + $0x8] sm:$0xff] %vm1056_vm1, %v1053_v38 }
 0x407 PF: > { %s14_s17 = sadd.s32 1, %s1454_s17   ;;  %s1767_s15 = smov %s1450_s16 }
 0x408   : > { %p11_p5 = scmp.ge.s32.totalorder %s14_s17, 4   ;;  %s1768_s16 = smov %s1770_s18 }
 0x40a   :  { %13 = sbr.rel (!%p11_p5) target bundleno = 2 (0x2), region = 75 }

</bundles_post_ra>
